<compile_context>
chip_gen: v7x
topology: tpu7x:2x2x1
jax: 0.10.0
libtpu: 0.0.40
codegen_flags: <defaults>
</compile_context>

<pallas_src>
import jax
import jax.numpy as jnp
import numpy as np
from jax.experimental import pallas as pl
from jax.experimental.pallas import tpu as pltpu


# ---------------------------------------------------------------------------
# Scalar module parameter + forward
# ---------------------------------------------------------------------------
def make_scalar_params(init_value: float) -> jax.Array:
    """Mirror Scalar.__init__(init_value). Stored 1-D (1,): f32[1] pads to 4 B
    in SMEM, whereas a 2-D (1,1) would pad to a full [8,128]-word tile."""
    return jnp.full((1,), init_value, dtype=jnp.float32)


def scalar_forward(constant_param: jax.Array) -> jax.Array:
    """Production path for Scalar.forward(): return the 0-d parameter, no kernel."""
    return constant_param.reshape(())


# ---------------------------------------------------------------------------
# Pallas-mandated identity path: SMEM-only scalar copy, no buffer donation.
# ---------------------------------------------------------------------------
def _scalar_identity_kernel(const_ref, out_ref):
    # Pure scalar path (sld/sst): no vector slots, no padded VMEM tile,
    # no masked partial store.
    out_ref[0] = const_ref[0]


def scalar_forward_pallas(constant_param: jax.Array) -> jax.Array:
    out = pl.pallas_call(
        _scalar_identity_kernel,
        out_shape=jax.ShapeDtypeStruct((1,), jnp.float32),
        in_specs=[pl.BlockSpec(memory_space=pltpu.SMEM)],
        out_specs=pl.BlockSpec(memory_space=pltpu.SMEM),
    )(constant_param)
    return out.reshape(())


# ---------------------------------------------------------------------------
# Consumer-fusion pattern: the scalar is consumed inside the downstream
# kernel via SMEM; the activation is tiled over a row grid so Pallas
# double-buffers DMA and overlaps it with the VPU multiply.
# ---------------------------------------------------------------------------
# Tile budget: <= ~8 MiB per tile buffer so input+output double-buffering
# (4 buffers) stays well inside v7x's 64 MiB physical VMEM.
_TILE_TARGET_BYTES = 8 * 1024 * 1024
# Raised above the 16/32 MiB scoped defaults, with headroom below v7x's 64 MiB.
_VMEM_LIMIT_BYTES = 48 * 1024 * 1024
_MAX_TILE_ROWS = 2048


def _choose_row_tile(rows: int, cols: int, itemsize: int) -> int:
    max_rows = _TILE_TARGET_BYTES // max(cols * itemsize, 1)
    max_rows = max(8, (max_rows // 8) * 8)          # keep multiple of 8 sublanes
    return int(min(rows, max_rows, _MAX_TILE_ROWS))


def _scale_kernel(scale_ref, x_ref, o_ref):
    # Read the SMEM scalar once per grid step and cast it to the activation
    # dtype so the VPU math / HBM traffic stay in x.dtype (bf16 stays bf16).
    s = scale_ref[0].astype(x_ref.dtype)
    o_ref[...] = (x_ref[...] * s).astype(o_ref.dtype)


def scale_by_scalar(x: jax.Array, constant_param: jax.Array,
                    row_tile: int | None = None) -> jax.Array:
    """Fused consumer: y = x * Scalar(). `row_tile` is only for testing."""
    orig_shape = x.shape
    cols = orig_shape[-1] if x.ndim >= 1 else 1
    rows = max(x.size // max(cols, 1), 1)
    x2 = x.reshape(rows, cols)
    itemsize = np.dtype(x2.dtype).itemsize

    if rows % 8 == 0 and cols % 128 == 0:
        # Tiled, pipelined, lane-dense path.
        tr = row_tile if row_tile is not None else _choose_row_tile(rows, cols, itemsize)
        tr = max(8, min(tr, rows))
        out2 = pl.pallas_call(
            _scale_kernel,
            out_shape=jax.ShapeDtypeStruct((rows, cols), x2.dtype),
            grid=(pl.cdiv(rows, tr),),
            in_specs=[
                pl.BlockSpec(memory_space=pltpu.SMEM),          # the Scalar parameter
                pl.BlockSpec((tr, cols), lambda i: (i, 0)),     # activation row tile
            ],
            out_specs=pl.BlockSpec((tr, cols), lambda i: (i, 0)),  # lane-dense output
            compiler_params=pltpu.CompilerParams(
                dimension_semantics=("parallel",),   # shards across v7x's 2 TCs
                vmem_limit_bytes=_VMEM_LIMIT_BYTES,
            ),
        )(constant_param, x2)
    else:
        # Ragged / tiny fallback: whole-array block (only sensible for small x).
        out2 = pl.pallas_call(
            _scale_kernel,
            out_shape=jax.ShapeDtypeStruct((rows, cols), x2.dtype),
            in_specs=[
                pl.BlockSpec(memory_space=pltpu.SMEM),
                pl.BlockSpec(memory_space=pltpu.VMEM),
            ],
            out_specs=pl.BlockSpec(memory_space=pltpu.VMEM),
        )(constant_param, x2)

    return out2.reshape(orig_shape)


if __name__ == "__main__":
    key = jax.random.PRNGKey(0)  # randomness only used for the fusion demos

    init_value = 0.5
    constant = make_scalar_params(init_value)

    # 1) Forward pass: kernel-free production path (matches PyTorch 0-d return).
    result = scalar_forward(constant)
    jax.block_until_ready(result)
    assert result.shape == ()
    assert result.dtype == jnp.float32
    assert float(result) == init_value

    # 2) Forward pass: Pallas identity kept on the SMEM scalar path.
    result_pl = scalar_forward_pallas(constant)
    jax.block_until_ready(result_pl)
    assert result_pl.shape == ()
    assert result_pl.dtype == jnp.float32
    assert float(result_pl) == init_value

    # 3) Fusion demo (tiled path): small data, forced row_tile=128 so the
    #    1-D grid runs multiple pipelined steps (512 rows -> 4 steps).
    x = jax.random.normal(key, (512, 256), dtype=jnp.float32)
    y = scale_by_scalar(x, constant, row_tile=128)
    jax.block_until_ready(y)
    assert y.shape == x.shape and y.dtype == x.dtype
    assert jnp.allclose(y, x * init_value)

    # 3b) bf16 stays bf16 end-to-end (HBM bytes halved; scalar cast in-kernel).
    xb = x.astype(jnp.bfloat16)
    yb = scale_by_scalar(xb, constant)
    jax.block_until_ready(yb)
    assert yb.dtype == jnp.bfloat16
    assert jnp.allclose(yb.astype(jnp.float32),
                        (xb * jnp.bfloat16(init_value)).astype(jnp.float32))

    # 3c) Ragged fallback path (last dim not a multiple of 128).
    xr = jax.random.normal(key, (2, 4, 16, 16), dtype=jnp.float32)
    yr = scale_by_scalar(xr, constant)
    jax.block_until_ready(yr)
    assert yr.shape == xr.shape
    assert jnp.allclose(yr, xr * init_value)

    print("KERNEL_OK")
</pallas_src>

<mosaic_0001>
module attributes {stable_mosaic.version = 11 : i64} {
  func.func @_scalar_identity_kernel(%arg0: memref<1xf32, #tpu.memory_space<smem>>, %arg1: memref<1xf32, #tpu.memory_space<smem>>) attributes {dimension_semantics = [], scalar_prefetch = 0 : i64, scratch_operands = 0 : i64, tpu.core_type = #tpu.core_type<tc>} {
    %c0 = arith.constant 0 : index
    %0 = memref.load %arg0[%c0] : memref<1xf32, #tpu.memory_space<smem>>
    %c0_0 = arith.constant 0 : index
    %1 = memref.load %arg1[%c0_0] : memref<1xf32, #tpu.memory_space<smem>>
    memref.store %0, %arg1[%c0_0] : memref<1xf32, #tpu.memory_space<smem>>
    return
  }
}

</mosaic_0001>

<bundles_post_ra>
// kernel: tpu_custom_call.1
= control target key start
LH: loop header
LB: loop body
LE: loop exit
PB: predicated region body
PF: predicated region fallthrough
CT: control target
= control target key end

     0   :  { %7 = vsyncpa [#allocation4], 0  ;;  %s65_s0 = inlined_call_operand.<no memory space> [shape: f32[1], index: 0, kind: input, shape index: {}]   ;;  %s66_s1 = inlined_call_operand.hbm [shape: f32[1], index: 1, kind: output, shape index: {}]  }
   0x1   :  { %12 = sst [smem:[#allocation3]] %s65_s0  ;;  %s27_s10 = scalar_lea.hbm %s66_s1, 16 }
   0x2   :  { %p28_p0 = scmp.ne.s32.totalorder %s66_s1, %s27_s10  ;;  %p31_p1 = scmp.lt.u32.totalorder %s27_s10, %s66_s1 }
   0x4   :  { %p33_p2 = pnand %p31_p1, %p28_p0 }
   0x6   :  { %36 = shalt.err (!%p33_p2)
}
   0x7   :  { %s39_s15 = smov [#allocation3]  }
   0x8   :  { %20 = dma.smem_to_hbm %s39_s15, 16, %s66_s1, [#allocation4]  }
   0x9   :  { %37 = dma.done.wait [#allocation4], 16  }
   0xa   :  { %38 = vsyncadd [#allocation4], 4294967280 }
   0xb   :  { %24 = sfence }
   0xc   :  { %25 = vsyncpa [#allocation4], 1 }

</bundles_post_ra>
